<compile_context>
chip_gen: v5e
topology: v5e:2x2
jax: 0.10.0
libtpu: 0.0.40
codegen_flags: <defaults>
</compile_context>

<pallas_src>
import jax
import jax.numpy as jnp
from jax.experimental import pallas as pl
from jax.experimental.pallas import tpu as pltpu

INPUT_SIZE = 28 * 28      # 784
HIDDEN_SIZE = 196
OUTPUT_SIZE = 10

HIDDEN_PAD = 256          # 196 -> 256 (2 dense lane tiles)
OUT_PAD = 128             # 10  -> 128 (1 dense lane tile, unmasked vst)


def mlp_logsoftmax_kernel(x_ref, w1_ref, b1_ref, w2_ref, b2_ref, o_ref):
    # fc1 on the MXU: cast the f32 x tile to bf16 in-register (no extra HBM
    # pass), bf16 x bf16 -> f32 accumulate.
    x_bf = x_ref[...].astype(jnp.bfloat16)
    h = jnp.dot(x_bf, w1_ref[...], preferred_element_type=jnp.float32)
    h = jnp.maximum(h + b1_ref[...], 0.0)          # f32 epilogue (bias + ReLU)

    # fc2 also in bf16 on the MXU (tiny weights, f32 accumulate).
    z = jnp.dot(h.astype(jnp.bfloat16), w2_ref[...],
                preferred_element_type=jnp.float32) + b2_ref[...]

    # Mask the padded class lanes so the log_softmax reduction only sees the
    # logical 10 classes (exp of -1e30 underflows to exactly 0).  NOTE: plain
    # Python literal -> no captured array constant.
    cls = jax.lax.broadcasted_iota(jnp.int32, z.shape, 1)
    z = jnp.where(cls < OUTPUT_SIZE, z, -1e30)

    # Numerically-stable log_softmax over the class axis.
    m = jnp.max(z, axis=1, keepdims=True)
    e = jnp.exp(z - m)
    lse = jnp.log(jnp.sum(e, axis=1, keepdims=True)) + m
    o_ref[...] = (z - lse).astype(o_ref.dtype)


def _round_up(n, m):
    return ((n + m - 1) // m) * m


def _pick_tb(B):
    """Batch tile: ~512 rows, multiple of 16, >=2 tiles (v7x megacore) when
    the batch is large enough, minimal padding for awkward B."""
    TARGET = 512
    n_tiles = pl.cdiv(B, TARGET)
    if B >= 32:
        n_tiles = max(n_tiles, 2)
    tb = _round_up(pl.cdiv(B, n_tiles), 16)
    return max(tb, 16)


def prepare_params(w1, b1, w2, b2):
    """Pad + cast weights ONCE (reused across forward calls)."""
    w1_p = jnp.zeros((INPUT_SIZE, HIDDEN_PAD), jnp.bfloat16).at[:, :HIDDEN_SIZE].set(
        w1.astype(jnp.bfloat16))
    b1_p = jnp.zeros((1, HIDDEN_PAD), jnp.float32).at[:, :HIDDEN_SIZE].set(
        b1.reshape(1, HIDDEN_SIZE).astype(jnp.float32))
    w2_p = jnp.zeros((HIDDEN_PAD, OUT_PAD), jnp.bfloat16).at[:HIDDEN_SIZE, :OUTPUT_SIZE].set(
        w2.astype(jnp.bfloat16))
    b2_p = jnp.zeros((1, OUT_PAD), jnp.float32).at[:, :OUTPUT_SIZE].set(
        b2.reshape(1, OUTPUT_SIZE).astype(jnp.float32))
    return w1_p, b1_p, w2_p, b2_p


def net_forward(x, params):
    """x: [B, 784] f32; params: output of prepare_params(). Returns [B, 10]."""
    w1_p, b1_p, w2_p, b2_p = params
    B = x.shape[0]
    TB = _pick_tb(B)
    B_pad = _round_up(B, TB)

    x = x.astype(jnp.float32)
    if B_pad != B:
        x_p = jnp.zeros((B_pad, INPUT_SIZE), jnp.float32).at[:B].set(x)
    else:
        x_p = x

    grid = (B_pad // TB,)

    cost = pl.CostEstimate(
        flops=2 * B_pad * INPUT_SIZE * HIDDEN_PAD + 2 * B_pad * HIDDEN_PAD * OUT_PAD,
        transcendentals=B_pad * OUT_PAD + B_pad,            # exp + log
        bytes_accessed=(x_p.size * 4 + w1_p.size * 2 + b1_p.size * 4
                        + w2_p.size * 2 + b2_p.size * 4 + B_pad * OUT_PAD * 4),
    )

    out_pad = pl.pallas_call(
        mlp_logsoftmax_kernel,
        out_shape=jax.ShapeDtypeStruct((B_pad, OUT_PAD), jnp.float32),
        grid=grid,
        in_specs=[
            pl.BlockSpec((TB, INPUT_SIZE), lambda i: (i, 0)),           # x tile (f32)
            pl.BlockSpec((INPUT_SIZE, HIDDEN_PAD), lambda i: (0, 0)),   # W1 resident (bf16)
            pl.BlockSpec((1, HIDDEN_PAD), lambda i: (0, 0)),            # b1 resident (f32)
            pl.BlockSpec((HIDDEN_PAD, OUT_PAD), lambda i: (0, 0)),      # W2 resident (bf16)
            pl.BlockSpec((1, OUT_PAD), lambda i: (0, 0)),               # b2 resident (f32)
        ],
        out_specs=pl.BlockSpec((TB, OUT_PAD), lambda i: (i, 0)),
        compiler_params=pltpu.CompilerParams(
            dimension_semantics=("parallel",)),
        cost_estimate=cost,
    )(x_p, w1_p, b1_p, w2_p, b2_p)

    return out_pad[:B, :OUTPUT_SIZE]


def _reference(x, w1, b1, w2, b2):
    # Same numerics as the kernel: bf16 operands for both matmuls with f32
    # accumulate, f32 bias / ReLU / log_softmax.
    h = jnp.maximum(
        jnp.dot(x.astype(jnp.bfloat16), w1.astype(jnp.bfloat16),
                preferred_element_type=jnp.float32) + b1.reshape(1, -1), 0.0)
    z = jnp.dot(h.astype(jnp.bfloat16), w2.astype(jnp.bfloat16),
                preferred_element_type=jnp.float32) + b2.reshape(1, -1)
    return jax.nn.log_softmax(z, axis=1)


if __name__ == "__main__":
    key = jax.random.PRNGKey(0)
    kx, k1, k2, k3, k4 = jax.random.split(key, 5)

    B = 8  # small demo batch

    # Deterministic synthetic parameters (PyTorch Linear-like uniform init),
    # stored already transposed to [in, out].
    bound1 = 1.0 / (INPUT_SIZE ** 0.5)
    bound2 = 1.0 / (HIDDEN_SIZE ** 0.5)
    w1 = jax.random.uniform(k1, (INPUT_SIZE, HIDDEN_SIZE), jnp.float32, -bound1, bound1)
    b1 = jax.random.uniform(k2, (1, HIDDEN_SIZE), jnp.float32, -bound1, bound1)
    w2 = jax.random.uniform(k3, (HIDDEN_SIZE, OUTPUT_SIZE), jnp.float32, -bound2, bound2)
    b2 = jax.random.uniform(k4, (1, OUTPUT_SIZE), jnp.float32, -bound2, bound2)

    x = jax.random.normal(kx, (B, INPUT_SIZE), jnp.float32)

    params = prepare_params(w1, b1, w2, b2)   # pad/cast weights once
    out = net_forward(x, params)
    out = jax.block_until_ready(out)

    ref = _reference(x, w1, b1, w2, b2)
    assert out.shape == (B, OUTPUT_SIZE)
    assert jnp.allclose(out, ref, atol=5e-3, rtol=5e-3)

    print("KERNEL_OK")
</pallas_src>

<mosaic_0001>
module attributes {stable_mosaic.version = 11 : i64} {
  func.func @mlp_logsoftmax_kernel(%arg0: i32, %arg1: memref<16x784xf32, #tpu.memory_space<vmem>>, %arg2: memref<784x256xbf16, #tpu.memory_space<vmem>>, %arg3: memref<1x256xf32, #tpu.memory_space<vmem>>, %arg4: memref<256x128xbf16, #tpu.memory_space<vmem>>, %arg5: memref<1x128xf32, #tpu.memory_space<vmem>>, %arg6: memref<16x128xf32, #tpu.memory_space<vmem>>) attributes {dimension_semantics = [#tpu.dimension_semantics<parallel>], iteration_bounds = array<i64: 1>, scalar_prefetch = 0 : i64, scratch_operands = 0 : i64, tpu.core_type = #tpu.core_type<tc>, window_params = [{transform_indices = @transform_0, window_bounds = array<i64: 16, 784>}, {pipeline_mode = #tpu.pipeline_mode<synchronous>, transform_indices = @transform_1, window_bounds = array<i64: 784, 256>}, {pipeline_mode = #tpu.pipeline_mode<synchronous>, transform_indices = @transform_2, window_bounds = array<i64: 1, 256>}, {pipeline_mode = #tpu.pipeline_mode<synchronous>, transform_indices = @transform_3, window_bounds = array<i64: 256, 128>}, {pipeline_mode = #tpu.pipeline_mode<synchronous>, transform_indices = @transform_4, window_bounds = array<i64: 1, 128>}, {transform_indices = @transform_5, window_bounds = array<i64: 16, 128>}]} {
    %c0 = arith.constant 0 : index
    %c0_0 = arith.constant 0 : index
    %0 = vector.load %arg1[%c0, %c0_0] : memref<16x784xf32, #tpu.memory_space<vmem>>, vector<16x784xf32>
    %1 = arith.truncf %0 : vector<16x784xf32> to vector<16x784xbf16>
    %c0_1 = arith.constant 0 : index
    %c0_2 = arith.constant 0 : index
    %2 = vector.load %arg2[%c0_1, %c0_2] : memref<784x256xbf16, #tpu.memory_space<vmem>>, vector<784x256xbf16>
    %cst = arith.constant dense<0.000000e+00> : vector<16x256xf32>
    %3 = tpu.matmul %1, %2, %cst {dimension_numbers = #tpu.dot_dimension_numbers<[1], [0], [0], [1], [0, 0, 1, 1], [], []>} : vector<16x784xbf16>, vector<784x256xbf16>, vector<16x256xf32> -> vector<16x256xf32>
    %c0_3 = arith.constant 0 : index
    %c0_4 = arith.constant 0 : index
    %4 = vector.load %arg3[%c0_3, %c0_4] : memref<1x256xf32, #tpu.memory_space<vmem>>, vector<1x256xf32>
    %5 = vector.broadcast %4 : vector<1x256xf32> to vector<16x256xf32>
    %6 = arith.addf %3, %5 : vector<16x256xf32>
    %cst_5 = arith.constant 0.000000e+00 : f32
    %7 = vector.broadcast %cst_5 : f32 to vector<16x256xf32>
    %8 = arith.maximumf %6, %7 : vector<16x256xf32>
    %9 = arith.truncf %8 : vector<16x256xf32> to vector<16x256xbf16>
    %c0_6 = arith.constant 0 : index
    %c0_7 = arith.constant 0 : index
    %10 = vector.load %arg4[%c0_6, %c0_7] : memref<256x128xbf16, #tpu.memory_space<vmem>>, vector<256x128xbf16>
    %cst_8 = arith.constant dense<0.000000e+00> : vector<16x128xf32>
    %11 = tpu.matmul %9, %10, %cst_8 {dimension_numbers = #tpu.dot_dimension_numbers<[1], [0], [0], [1], [0, 0, 1, 1], [], []>} : vector<16x256xbf16>, vector<256x128xbf16>, vector<16x128xf32> -> vector<16x128xf32>
    %c0_9 = arith.constant 0 : index
    %c0_10 = arith.constant 0 : index
    %12 = vector.load %arg5[%c0_9, %c0_10] : memref<1x128xf32, #tpu.memory_space<vmem>>, vector<1x128xf32>
    %13 = vector.broadcast %12 : vector<1x128xf32> to vector<16x128xf32>
    %14 = arith.addf %11, %13 : vector<16x128xf32>
    %15 = tpu.iota {dimensions = array<i32: 1>} : vector<16x128xi32>
    %c10_i32 = arith.constant 10 : i32
    %16 = vector.broadcast %c10_i32 : i32 to vector<16x128xi32>
    %17 = arith.cmpi slt, %15, %16 : vector<16x128xi32>
    %cst_11 = arith.constant -1.000000e+30 : f32
    %18 = vector.broadcast %cst_11 : f32 to vector<16x128xf32>
    %19 = arith.select %17, %14, %18 : vector<16x128xi1>, vector<16x128xf32>
    %cst_12 = arith.constant dense<0xFF800000> : vector<16xf32>
    %20 = vector.multi_reduction <maximumf>, %19, %cst_12 [1] : vector<16x128xf32> to vector<16xf32>
    %21 = vector.shape_cast %20 : vector<16xf32> to vector<16x1xf32>
    %22 = vector.broadcast %21 : vector<16x1xf32> to vector<16x128xf32>
    %23 = arith.subf %19, %22 : vector<16x128xf32>
    %24 = math.exp %23 : vector<16x128xf32>
    %cst_13 = arith.constant dense<0.000000e+00> : vector<16xf32>
    %25 = vector.multi_reduction <add>, %24, %cst_13 [1] : vector<16x128xf32> to vector<16xf32>
    %26 = vector.shape_cast %25 : vector<16xf32> to vector<16x1xf32>
    %27 = math.log %26 : vector<16x1xf32>
    %28 = arith.addf %27, %21 : vector<16x1xf32>
    %29 = vector.broadcast %28 : vector<16x1xf32> to vector<16x128xf32>
    %30 = arith.subf %19, %29 : vector<16x128xf32>
    %c0_14 = arith.constant 0 : index
    %c0_15 = arith.constant 0 : index
    %31 = vector.load %arg6[%c0_14, %c0_15] : memref<16x128xf32, #tpu.memory_space<vmem>>, vector<16x128xf32>
    tpu.vector_store %arg6[%c0_14, %c0_15], %30 {strides = array<i32>} : memref<16x128xf32, #tpu.memory_space<vmem>>, vector<16x128xf32>,
    return
  }
  func.func @transform_0(%arg0: i32) -> (i32, i32) {
    %c0_i32 = arith.constant 0 : i32
    %c0_i32_0 = arith.constant 0 : i32
    return %arg0, %c0_i32 : i32, i32
  }
  func.func @transform_1(%arg0: i32) -> (i32, i32) {
    %c0_i32 = arith.constant 0 : i32
    %c0_i32_0 = arith.constant 0 : i32
    %c0_i32_1 = arith.constant 0 : i32
    return %c0_i32, %c0_i32_0 : i32, i32
  }
  func.func @transform_2(%arg0: i32) -> (i32, i32) {
    %c0_i32 = arith.constant 0 : i32
    %c0_i32_0 = arith.constant 0 : i32
    %c0_i32_1 = arith.constant 0 : i32
    return %c0_i32, %c0_i32_0 : i32, i32
  }
  func.func @transform_3(%arg0: i32) -> (i32, i32) {
    %c0_i32 = arith.constant 0 : i32
    %c0_i32_0 = arith.constant 0 : i32
    %c0_i32_1 = arith.constant 0 : i32
    return %c0_i32, %c0_i32_0 : i32, i32
  }
  func.func @transform_4(%arg0: i32) -> (i32, i32) {
    %c0_i32 = arith.constant 0 : i32
    %c0_i32_0 = arith.constant 0 : i32
    %c0_i32_1 = arith.constant 0 : i32
    return %c0_i32, %c0_i32_0 : i32, i32
  }
  func.func @transform_5(%arg0: i32) -> (i32, i32) {
    %c0_i32 = arith.constant 0 : i32
    %c0_i32_0 = arith.constant 0 : i32
    return %arg0, %c0_i32 : i32, i32
  }
}

</mosaic_0001>

<bundles_post_ra>
// kernel: tpu_custom_call.1
= control target key start
LH: loop header
LB: loop body
LE: loop exit
PB: predicated region body
PF: predicated region fallthrough
CT: control target
= control target key end

     0   :  { %10 = vsyncpa [#allocation3], 0  ;;  %s1929_s0 = inlined_call_operand.hbm [shape: f32[16,784], index: 0, kind: input, shape index: {}]   ;;  %s1930_s1 = inlined_call_operand.hbm [shape: bf16[784,256], index: 1, kind: input, shape index: {}]   ;;  %s1931_s2 = inlined_call_operand.hbm [shape: f32[1,256], index: 2, kind: input, shape index: {}]   ;;  %s1932_s3 = inlined_call_operand.hbm [shape: bf16[256,128], index: 3, kind: input, shape index: {}]   ;;  %s1933_s4 = inlined_call_operand.vmem [shape: f32[1,128], index: 4, kind: input, shape index: {}]   ;;  %s1934_s5 = inlined_call_operand.hbm [shape: f32[16,128], index: 5, kind: output, shape index: {}]  }
   0x1   :  { %11 = vsyncpa [#allocation6], 0 }
   0x2   :  { %12 = vsyncpa [#allocation9], 0  ;;  %s31_s20 = sshll.u32 %s1930_s1, 4  ;;  %s32_s20 = int_to_ptr.hbm [resolvable:$true] %s31_s20 }
   0x3   :  { %13 = vsyncpa [#allocation4], 0  ;;  %s1834_s21 = smov [#allocation5]   ;;  %s18_s25 = sshll.u32 %s1929_s0, 4  ;;  %s19_s25 = int_to_ptr.hbm [resolvable:$true] %s18_s25 }
   0x4   :  { %s33_s22 = sshll.u32 %s1834_s21, 4  ;;  %s1835_s26 = smov 128   ;;  %s34_s22 = int_to_ptr.vmem [resolvable:$true] %s33_s22 }
   0x5   :  { %s1836_s27 = smov 8   ;;  %s1837_s28 = smov [#allocation2]  }
   0x6   :  { %39 = dma.hbm_to_vmem [thread:$0]  %s32_s20, 12544, %s34_s22, [#allocation6], %s1835_s26, %s1835_s26, %s1836_s27  }
   0x7   :  { %s20_s29 = sshll.u32 %s1837_s28, 4  ;;  %s1838_s1 = smov 896   ;;  %s21_s29 = int_to_ptr.vmem [resolvable:$true] %s20_s29 }
   0x8   :  { %s1839_s30 = smov 56   ;;  %s45_s8 = sshll.u32 %s1931_s2, 4  ;;  %s46_s8 = int_to_ptr.hbm [resolvable:$true] %s45_s8 }
   0x9   :  { %26 = dma.hbm_to_vmem [thread:$0]  %s19_s25, 1792, %s21_s29, [#allocation3], %s1838_s1, %s1838_s1, %s1839_s30  }
   0xa   :  { %s1840_s9 = smov [#allocation7]   ;;  %s55_s12 = sshll.u32 %s1932_s3, 4  ;;  %s56_s12 = int_to_ptr.hbm [resolvable:$true] %s55_s12 }
   0xb   :  { %s47_s0 = sshll.u32 %s1840_s9, 4  ;;  %s1841_s13 = smov [#allocation8]   ;;  %s48_s0 = int_to_ptr.vmem [resolvable:$true] %s47_s0 }
   0xc   :  { %50 = dma.hbm_to_vmem [thread:$0]  %s46_s8, 32, %s48_s0, [#allocation6]  }
   0xd   :  { %s57_s14 = sshll.u32 %s1841_s13, 4  ;;  %s1842_s15 = smov 64   ;;  %s58_s14 = int_to_ptr.vmem [resolvable:$true] %s57_s14 }
   0xe   :  { %s1843_s16 = smov 4  }
   0xf   :  { %63 = dma.hbm_to_vmem [thread:$0]  %s56_s12, 2048, %s58_s14, [#allocation9], %s1842_s15, %s1842_s15, %s1843_s16  }
  0x10   :  { %1826 = dma.done.wait [#allocation3], 1792  }
  0x11   :  { %1827 = vsyncadd [#allocation3], 4294965504 }
  0x12   :  { %1828 = dma.done.wait [#allocation6], 12576  }
  0x13   :  { %1829 = vsyncadd [#allocation6], 4294954720 }
  0x14   :  { %1830 = dma.done.wait [#allocation9], 2048  }
  0x15   :  { %1831 = vsyncadd [#allocation9], 4294965248  ;;  %v1172_v0 = vld [vmem:[#allocation5 + $0x70] sm:$0xf]  ;;  %v1587_v1 = vld [vmem:[#allocation5 + $0x74] sm:$0xf0] }
  0x16   :  { %v1300_v2 = vld [vmem:[#allocation5 + $0x170] sm:$0xf]  ;;  %v1173_v3 = vor.u32 %v1587_v1, %v1172_v0  ;;  %v1619_v4 = vld [vmem:[#allocation5 + $0x174] sm:$0xf0]  ;;  %v1164_v11 = vld [vmem:[#allocation5 + $0x60] sm:$0xf] }
  0x17   :  { %v1364_v5 = vld [vmem:[#allocation5 + $0x1f0] sm:$0xf]  ;;  %v1635_v6 = vld [vmem:[#allocation5 + $0x1f4] sm:$0xf0]  ;;  %v1301_v7 = vor.u32 %v1619_v4, %v1300_v2  ;;  %v1585_v13 = vld [vmem:[#allocation5 + $0x64] sm:$0xf0] }
  0x18   :  { %v1365_v8 = vor.u32 %v1635_v6, %v1364_v5  ;;  %v1236_v9 = vld [vmem:[#allocation5 + $0xf0] sm:$0xf]  ;;  %v1603_v10 = vld [vmem:[#allocation5 + $0xf4] sm:$0xf0]  ;;  %702 = vmatpush.bf16.msra.mxu0 %v1173_v3  ;;  %v1292_v14 = vld [vmem:[#allocation5 + $0x160] sm:$0xf]  ;;  %v1165_v16 = vor.u32 %v1585_v13, %v1164_v11 }
  0x19   :  { %v1237_v12 = vor.u32 %v1603_v10, %v1236_v9  ;;  %v1617_v15 = vld [vmem:[#allocation5 + $0x164] sm:$0xf0]  ;;  %730 = vmatpush.bf16.msra.mxu2 %v1301_v7  ;;  %v1356_v18 = vld [vmem:[#allocation5 + $0x1e0] sm:$0xf]  ;;  %v1156_v23 = vld [vmem:[#allocation5 + $0x50] sm:$0xf] }
  0x1a   :  { %744 = vmatpush.bf16.msra.mxu3 %v1365_v8  ;;  %v1293_v17 = vor.u32 %v1617_v15, %v1292_v14  ;;  %v1633_v19 = vld [vmem:[#allocation5 + $0x1e4] sm:$0xf0]  ;;  %v1228_v20 = vld [vmem:[#allocation5 + $0xe0] sm:$0xf]  ;;  %v1583_v24 = vld [vmem:[#allocation5 + $0x54] sm:$0xf0] }
  0x1b   :  { %716 = vmatpush.bf16.msra.mxu1 %v1237_v12  ;;  %v1357_v21 = vor.u32 %v1633_v19, %v1356_v18  ;;  %v1601_v22 = vld [vmem:[#allocation5 + $0xe4] sm:$0xf0]  ;;  %v1284_v26 = vld [vmem:[#allocation5 + $0x150] sm:$0xf]  ;;  %v1615_v27 = vld [vmem:[#allocation5 + $0x154] sm:$0xf0]  ;;  %v1157_v29 = vor.u32 %v1583_v24, %v1156_v23 }
  0x1c   :  { %v1229_v25 = vor.u32 %v1601_v22, %v1228_v20  ;;  %v1348_v28 = vld [vmem:[#allocation5 + $0x1d0] sm:$0xf]  ;;  %703 = vmatpush.bf16.msra.mxu0 %v1165_v16  ;;  %v1631_v30 = vld [vmem:[#allocation5 + $0x1d4] sm:$0xf0]  ;;  %v1285_v33 = vor.u32 %v1615_v27, %v1284_v26  ;;  %v1148_v35 = vld [vmem:[#allocation5 + $0x40] sm:$0xf] }
  0x1d   :  { %v1220_v31 = vld [vmem:[#allocation5 + $0xd0] sm:$0xf]  ;;  %v1599_v32 = vld [vmem:[#allocation5 + $0xd4] sm:$0xf0]  ;;  %731 = vmatpush.bf16.msra.mxu2 %v1293_v17  ;;  %v1349_v34 = vor.u32 %v1631_v30, %v1348_v28  ;;  %v1581_v36 = vld [vmem:[#allocation5 + $0x44] sm:$0xf0] }
  0x1e   :  { %745 = vmatpush.bf16.msra.mxu3 %v1357_v21  ;;  %v1276_v37 = vld [vmem:[#allocation5 + $0x140] sm:$0xf]  ;;  %v1221_v38 = vor.u32 %v1599_v32, %v1220_v31  ;;  %v1613_v39 = vld [vmem:[#allocation5 + $0x144] sm:$0xf0]  ;;  %v1149_v44 = vor.u32 %v1581_v36, %v1148_v35  ;;  %v1140_v47 = vld [vmem:[#allocation5 + $0x30] sm:$0xf] }
  0x1f   :  { %717 = vmatpush.bf16.msra.mxu1 %v1229_v25  ;;  %v1340_v40 = vld [vmem:[#allocation5 + $0x1c0] sm:$0xf]  ;;  %v1629_v41 = vld [vmem:[#allocation5 + $0x1c4] sm:$0xf0]  ;;  %v1277_v45 = vor.u32 %v1613_v39, %v1276_v37  ;;  %v1579_v48 = vld [vmem:[#allocation5 + $0x34] sm:$0xf0] }
  0x20   :  { %v1212_v42 = vld [vmem:[#allocation5 + $0xc0] sm:$0xf]  ;;  %v1597_v43 = vld [vmem:[#allocation5 + $0xc4] sm:$0xf0]  ;;  %704 = vmatpush.bf16.msra.mxu0 %v1157_v29  ;;  %v1341_v46 = vor.u32 %v1629_v41, %v1340_v40  ;;  %v1268_v49 = vld [vmem:[#allocation5 + $0x130] sm:$0xf]  ;;  %v1141_v56 = vor.u32 %v1579_v48, %v1140_v47 }
  0x21   :  { %732 = vmatpush.bf16.msra.mxu2 %v1285_v33  ;;  %v1213_v50 = vor.u32 %v1597_v43, %v1212_v42  ;;  %v1611_v51 = vld [vmem:[#allocation5 + $0x134] sm:$0xf0]  ;;  %v1332_v52 = vld [vmem:[#allocation5 + $0x1b0] sm:$0xf]  ;;  %v1132_v59 = vld [vmem:[#allocation5 + $0x20] sm:$0xf] }
  0x22   :  { %746 = vmatpush.bf16.msra.mxu3 %v1349_v34  ;;  %v1627_v53 = vld [vmem:[#allocation5 + $0x1b4] sm:$0xf0]  ;;  %v1204_v54 = vld [vmem:[#allocation5 + $0xb0] sm:$0xf]  ;;  %v1269_v57 = vor.u32 %v1611_v51, %v1268_v49  ;;  %v1577_v60 = vld [vmem:[#allocation5 + $0x24] sm:$0xf0] }
  0x23   :  { %718 = vmatpush.bf16.msra.mxu1 %v1221_v38  ;;  %v1595_v55 = vld [vmem:[#allocation5 + $0xb4] sm:$0xf0]  ;;  %v1333_v58 = vor.u32 %v1627_v53, %v1332_v52  ;;  %v1260_v61 = vld [vmem:[#allocation5 + $0x120] sm:$0xf]  ;;  %v1609_v63 = vld [vmem:[#allocation5 + $0x124] sm:$0xf0]  ;;  %v1133_v4 = vor.u32 %v1577_v60, %v1132_v59 }
  0x24   :  { %705 = vmatpush.bf16.msra.mxu0 %v1149_v44  ;;  %v1205_v62 = vor.u32 %v1595_v55, %v1204_v54  ;;  %v1324_v0 = vld [vmem:[#allocation5 + $0x1a0] sm:$0xf]  ;;  %v1625_v1 = vld [vmem:[#allocation5 + $0x1a4] sm:$0xf0]  ;;  %v1124_v5 = vld [vmem:[#allocation5 + $0x10] sm:$0xf]  ;;  %v1261_v6 = vor.u32 %v1609_v63, %v1260_v61 }
  0x25   :  { %733 = vmatpush.bf16.msra.mxu2 %v1277_v45  ;;  %v1196_v2 = vld [vmem:[#allocation5 + $0xa0] sm:$0xf]  ;;  %v1593_v3 = vld [vmem:[#allocation5 + $0xa4] sm:$0xf0]  ;;  %v1325_v7 = vor.u32 %v1625_v1, %v1324_v0  ;;  %v1575_v8 = vld [vmem:[#allocation5 + $0x14] sm:$0xf0] }
  0x26   :  { %747 = vmatpush.bf16.msra.mxu3 %v1341_v46  ;;  %v1252_v9 = vld [vmem:[#allocation5 + $0x110] sm:$0xf]  ;;  %v1607_v10 = vld [vmem:[#allocation5 + $0x114] sm:$0xf0]  ;;  %v1197_v11 = vor.u32 %v1593_v3, %v1196_v2  ;;  %v1116_v16 = vld [vmem:[#allocation5] sm:$0xf]  ;;  %v1125_v18 = vor.u32 %v1575_v8, %v1124_v5 }
  0x27   :  { %719 = vmatpush.bf16.msra.mxu1 %v1213_v50  ;;  %v1316_v12 = vld [vmem:[#allocation5 + $0x190] sm:$0xf]  ;;  %v1623_v13 = vld [vmem:[#allocation5 + $0x194] sm:$0xf0]  ;;  %v1573_v17 = vld [vmem:[#allocation5 + $0x4] sm:$0xf0]  ;;  %v1253_v23 = vor.u32 %v1607_v10, %v1252_v9 }
  0x28   :  { %706 = vmatpush.bf16.msra.mxu0 %v1141_v56  ;;  %v1188_v14 = vld [vmem:[#allocation5 + $0x90] sm:$0xf]  ;;  %v1591_v15 = vld [vmem:[#allocation5 + $0x94] sm:$0xf0]  ;;  %v1244_v19 = vld [vmem:[#allocation5 + $0x100] sm:$0xf]  ;;  %v1317_v24 = vor.u32 %v1623_v13, %v1316_v12  ;;  %v1117_v35 = vor.u32 %v1573_v17, %v1116_v16 }
  0x29   :  { %734 = vmatpush.bf16.msra.mxu2 %v1269_v57  ;;  %v1605_v20 = vld [vmem:[#allocation5 + $0x104] sm:$0xf0]  ;;  %v1308_v21 = vld [vmem:[#allocation5 + $0x180] sm:$0xf]  ;;  %v1428_v25 = vld [vmem:[#allocation5 + $0x270] sm:$0xf]  ;;  %v1189_v28 = vor.u32 %v1591_v15, %v1188_v14 }
  0x2a   :  { %748 = vmatpush.bf16.msra.mxu3 %v1333_v58  ;;  %v1621_v22 = vld [vmem:[#allocation5 + $0x184] sm:$0xf0]  ;;  %v1651_v26 = vld [vmem:[#allocation5 + $0x274] sm:$0xf0]  ;;  %v1586_v27 = vld [vmem:[#allocation5 + $0x74] sm:$0xf]  ;;  %v1245_v39 = vor.u32 %v1605_v20, %v1244_v19 }
  0x2b   :  { %720 = vmatpush.bf16.msra.mxu1 %v1205_v62  ;;  %v1174_v29 = vld [vmem:[#allocation5 + $0x78] sm:$0xf0]  ;;  %v1180_v30 = vld [vmem:[#allocation5 + $0x80] sm:$0xf]  ;;  %v1589_v31 = vld [vmem:[#allocation5 + $0x84] sm:$0xf0]  ;;  %v1309_v40 = vor.u32 %v1621_v22, %v1308_v21  ;;  %v1429_v44 = vor.u32 %v1651_v26, %v1428_v25 }
  0x2c   :  { %707 = vmatpush.bf16.msra.mxu0 %v1133_v4  ;;  %v85_v32 = vld [vmem:[#allocation2 + $0x10] sm:$0xff]  ;;  %v92_v33 = vld [vmem:[#allocation2 + $0x48] sm:$0xff]  ;;  %v1492_v34 = vld [vmem:[#allocation5 + $0x2f0] sm:$0xf]  ;;  %v1177_v45 = vor.u32 %v1586_v27, %v1174_v29  ;;  %v1181_v49 = vor.u32 %v1589_v31, %v1180_v30  ;;  %vm698_vm0 = vcmask 130048   ;;  %s1099_s20 = sshll.u32 %s1934_s5, 4  ;;  %s1100_s20 = int_to_ptr.hbm [resolvable:$true] %s1099_s20 }
  0x2d   :  { %735 = vmatpush.bf16.msra.mxu2 %v1261_v6  ;;  %v1667_v36 = vld [vmem:[#allocation5 + $0x2f4] sm:$0xf0]  ;;  %v1500_v37 = vld [vmem:[#allocation5 + $0x300] sm:$0xf]  ;;  %v1669_v38 = vld [vmem:[#allocation5 + $0x304] sm:$0xf0]  ;;  %v1890_v54 = vpack.c.bf16 %v92_v33, %v85_v32 }
  0x2e   :  { %749 = vmatpush.bf16.msra.mxu3 %v1325_v7  ;;  %v1602_v41 = vld [vmem:[#allocation5 + $0xf4] sm:$0xf]  ;;  %v1238_v42 = vld [vmem:[#allocation5 + $0xf8] sm:$0xf0]  ;;  %v90_v46 = vld [vmem:[#allocation2 + $0x38] sm:$0xff]  ;;  %v1501_v50 = vor.u32 %v1669_v38, %v1500_v37  ;;  %v1493_v55 = vor.u32 %v1667_v36, %v1492_v34 }
  0x2f   :  { %721 = vmatpush.bf16.msra.mxu1 %v1197_v11  ;;  %v83_v43 = vld [vmem:[#allocation2] sm:$0xff]  ;;  %v86_v47 = vld [vmem:[#allocation2 + $0x18] sm:$0xff]  ;;  %v93_v48 = vld [vmem:[#allocation2 + $0x50] sm:$0xff]  ;;  %v1241_v59 = vor.u32 %v1602_v41, %v1238_v42 }
  0x30   :  { %708 = vmatpush.bf16.msra.mxu0 %v1125_v18  ;;  %v1420_v51 = vld [vmem:[#allocation5 + $0x260] sm:$0xf]  ;;  %v1649_v52 = vld [vmem:[#allocation5 + $0x264] sm:$0xf0]  ;;  %v1584_v53 = vld [vmem:[#allocation5 + $0x64] sm:$0xf]  ;;  %v1892_v60 = vpack.c.bf16 %v90_v46, %v83_v43  ;;  %v1894_v63 = vpack.c.bf16 %v93_v48, %v86_v47 }
  0x31   :  { %736 = vmatpush.bf16.msra.mxu2 %v1253_v23  ;;  %v1166_v56 = vld [vmem:[#allocation5 + $0x68] sm:$0xf0]  ;;  %v84_v57 = vld [vmem:[#allocation2 + $0x8] sm:$0xff]  ;;  %v91_v58 = vld [vmem:[#allocation2 + $0x40] sm:$0xff]  ;;  %v1421_v0 = vor.u32 %v1649_v52, %v1420_v51 }
  0x32   :  { %750 = vmatpush.bf16.msra.mxu3 %v1317_v24  ;;  %v1484_v61 = vld [vmem:[#allocation5 + $0x2e0] sm:$0xf]  ;;  %v1665_v62 = vld [vmem:[#allocation5 + $0x2e4] sm:$0xf0]  ;;  %v1600_v1 = vld [vmem:[#allocation5 + $0xe4] sm:$0xf]  ;;  %v1169_v3 = vor.u32 %v1584_v53, %v1166_v56  ;;  %v1896_v4 = vpack.c.bf16 %v91_v58, %v84_v57 }
  0x33   :  { %722 = vmatpush.bf16.msra.mxu1 %v1189_v28  ;;  %v1230_v2 = vld [vmem:[#allocation5 + $0xe8] sm:$0xf0]  ;;  %v1412_v5 = vld [vmem:[#allocation5 + $0x250] sm:$0xf]  ;;  %v1647_v6 = vld [vmem:[#allocation5 + $0x254] sm:$0xf0]  ;;  %v1485_v7 = vor.u32 %v1665_v62, %v1484_v61 }
  0x34   :  { %709 = vmatpush.bf16.msra.mxu0 %v1117_v35  ;;  %v1582_v8 = vld [vmem:[#allocation5 + $0x54] sm:$0xf]  ;;  %v1158_v9 = vld [vmem:[#allocation5 + $0x58] sm:$0xf0]  ;;  %v1233_v10 = vor.u32 %v1600_v1, %v1230_v2  ;;  %v1476_v11 = vld [vmem:[#allocation5 + $0x2d0] sm:$0xf]  ;;  %v1413_v13 = vor.u32 %v1647_v6, %v1412_v5 }
  0x35   :  { %737 = vmatpush.bf16.msra.mxu2 %v1245_v39  ;;  %v1663_v12 = vld [vmem:[#allocation5 + $0x2d4] sm:$0xf0]  ;;  %v1598_v14 = vld [vmem:[#allocation5 + $0xd4] sm:$0xf]  ;;  %v1222_v15 = vld [vmem:[#allocation5 + $0xd8] sm:$0xf0]  ;;  %v1161_v16 = vor.u32 %v1582_v8, %v1158_v9 }
  0x36   :  { %751 = vmatpush.bf16.msra.mxu3 %v1309_v40  ;;  %v1404_v17 = vld [vmem:[#allocation5 + $0x240] sm:$0xf]  ;;  %v1645_v18 = vld [vmem:[#allocation5 + $0x244] sm:$0xf0]  ;;  %v1477_v19 = vor.u32 %v1663_v12, %v1476_v11  ;;  %v1580_v20 = vld [vmem:[#allocation5 + $0x44] sm:$0xf]  ;;  %v1225_v22 = vor.u32 %v1598_v14, %v1222_v15 }
  0x37   :  { %723 = vmatpush.bf16.msra.mxu1 %v1181_v49  ;;  %710 = vmatmul.bf16.vlgmr.msra.gmra.mxu0 %v1892_v60  ;;  %v1150_v21 = vld [vmem:[#allocation5 + $0x48] sm:$0xf0]  ;;  %v1468_v23 = vld [vmem:[#allocation5 + $0x2c0] sm:$0xf]  ;;  %v1661_v24 = vld [vmem:[#allocation5 + $0x2c4] sm:$0xf0]  ;;  %v1405_v25 = vor.u32 %v1645_v18, %v1404_v17 }
  0x38   :  { %758 = vmatpush.bf16.msrb.mxu0 %v1429_v44  ;;  %738 = vmatmul.bf16.vlgmr.msra.gmra.mxu2 %v1890_v54  ;;  %v1596_v26 = vld [vmem:[#allocation5 + $0xc4] sm:$0xf]  ;;  %v1214_v27 = vld [vmem:[#allocation5 + $0xc8] sm:$0xf0]  ;;  %v1153_v28 = vor.u32 %v1580_v20, %v1150_v21  ;;  %v1396_v29 = vld [vmem:[#allocation5 + $0x230] sm:$0xf]  ;;  %v1469_v31 = vor.u32 %v1661_v24, %v1468_v23 }
  0x39   :  { %793 = vmatpush.bf16.msrb.mxu2 %v1501_v50  ;;  %752 = vmatmul.bf16.vlgmr.msra.gmra.mxu3 %v1894_v63  ;;  %v1643_v30 = vld [vmem:[#allocation5 + $0x234] sm:$0xf0]  ;;  %v1578_v32 = vld [vmem:[#allocation5 + $0x34] sm:$0xf]  ;;  %v1142_v33 = vld [vmem:[#allocation5 + $0x38] sm:$0xf0]  ;;  %v1217_v35 = vor.u32 %v1596_v26, %v1214_v27 }
  0x3a   :  { %800 = vmatpush.bf16.msrb.mxu3 %v1177_v45  ;;  %724 = vmatmul.bf16.vlgmr.msra.gmra.mxu1 %v1896_v4  ;;  %v1460_v34 = vld [vmem:[#allocation5 + $0x2b0] sm:$0xf]  ;;  %v1659_v36 = vld [vmem:[#allocation5 + $0x2b4] sm:$0xf0]  ;;  %v89_v37 = vld [vmem:[#allocation2 + $0x30] sm:$0xff]  ;;  %v1397_v39 = vor.u32 %v1643_v30, %v1396_v29  ;;  %v1145_v42 = vor.u32 %v1578_v32, %v1142_v33 }
  0x3b   :  { %772 = vmatpush.bf16.msrb.mxu1 %v1493_v55  ;;  %v96_v38 = vld [vmem:[#allocation2 + $0x68] sm:$0xff]  ;;  %v1594_v40 = vld [vmem:[#allocation5 + $0xb4] sm:$0xf]  ;;  %v1388_v43 = vld [vmem:[#allocation5 + $0x220] sm:$0xf]  ;;  %v1461_v45 = vor.u32 %v1659_v36, %v1460_v34 }
  0x3c   :  { %759 = vmatpush.bf16.msrb.mxu0 %v1421_v0  ;;  %v1206_v41 = vld [vmem:[#allocation5 + $0xb8] sm:$0xf0]  ;;  %v1641_v44 = vld [vmem:[#allocation5 + $0x224] sm:$0xf0]  ;;  %v1576_v46 = vld [vmem:[#allocation5 + $0x24] sm:$0xf]  ;;  %v1902_v48 = vpack.c.bf16 %v96_v38, %v89_v37 }
  0x3d   :  { %814 = vmatpush.bf16.msra.mxu2 %v1241_v59  ;;  %v1134_v47 = vld [vmem:[#allocation5 + $0x28] sm:$0xf0]  ;;  %v1209_v49 = vor.u32 %v1594_v40, %v1206_v41  ;;  %v1452_v50 = vld [vmem:[#allocation5 + $0x2a0] sm:$0xf]  ;;  %v1657_v51 = vld [vmem:[#allocation5 + $0x2a4] sm:$0xf0]  ;;  %v1389_v52 = vor.u32 %v1641_v44, %v1388_v43 }
  0x3e   :  { %801 = vmatpush.bf16.msrb.mxu3 %v1169_v3  ;;  %v1592_v53 = vld [vmem:[#allocation5 + $0xa4] sm:$0xf]  ;;  %v1198_v55 = vld [vmem:[#allocation5 + $0xa8] sm:$0xf0]  ;;  %v1137_v56 = vor.u32 %v1576_v46, %v1134_v47  ;;  %v1380_v57 = vld [vmem:[#allocation5 + $0x210] sm:$0xf]  ;;  %v1453_v61 = vor.u32 %v1657_v51, %v1452_v50 }
  0x3f   :  { %773 = vmatpush.bf16.msrb.mxu1 %v1485_v7  ;;  %v1639_v58 = vld [vmem:[#allocation5 + $0x214] sm:$0xf0]  ;;  %v1574_v59 = vld [vmem:[#allocation5 + $0x14] sm:$0xf]  ;;  %v1126_v62 = vld [vmem:[#allocation5 + $0x18] sm:$0xf0]  ;;  %v1201_v2 = vor.u32 %v1592_v53, %v1198_v55 }
  0x40   :  { %760 = vmatpush.bf16.msrb.mxu0 %v1413_v13  ;;  %v1444_v0 = vld [vmem:[#allocation5 + $0x290] sm:$0xf]  ;;  %v1655_v1 = vld [vmem:[#allocation5 + $0x294] sm:$0xf0]  ;;  %v1590_v3 = vld [vmem:[#allocation5 + $0x94] sm:$0xf]  ;;  %v1381_v7 = vor.u32 %v1639_v58, %v1380_v57  ;;  %v1129_v11 = vor.u32 %v1574_v59, %v1126_v62 }
  0x41   :  { %815 = vmatpush.bf16.msra.mxu2 %v1233_v10  ;;  %v1190_v5 = vld [vmem:[#allocation5 + $0x98] sm:$0xf0]  ;;  %v1372_v6 = vld [vmem:[#allocation5 + $0x200] sm:$0xf]  ;;  %v1637_v8 = vld [vmem:[#allocation5 + $0x204] sm:$0xf0]  ;;  %v1445_v15 = vor.u32 %v1655_v1, %v1444_v0 }
  0x42   :  { %802 = vmatpush.bf16.msrb.mxu3 %v1161_v16  ;;  %v1572_v9 = vld [vmem:[#allocation5 + $0x4] sm:$0xf]  ;;  %v1118_v10 = vld [vmem:[#allocation5 + $0x8] sm:$0xf0]  ;;  %v1618_v12 = vld [vmem:[#allocation5 + $0x174] sm:$0xf]  ;;  %v1373_v23 = vor.u32 %v1637_v8, %v1372_v6 }
  0x43   :  { %774 = vmatpush.bf16.msrb.mxu1 %v1477_v19  ;;  %v1302_v13 = vld [vmem:[#allocation5 + $0x178] sm:$0xf0]  ;;  %v1650_v14 = vld [vmem:[#allocation5 + $0x274] sm:$0xf]  ;;  %v1436_v17 = vld [vmem:[#allocation5 + $0x280] sm:$0xf]  ;;  %v1193_v19 = vor.u32 %v1590_v3, %v1190_v5  ;;  %v1121_v27 = vor.u32 %v1572_v9, %v1118_v10 }
  0x44   :  { %761 = vmatpush.bf16.msrb.mxu0 %v1405_v25  ;;  %v1430_v16 = vld [vmem:[#allocation5 + $0x278] sm:$0xf0]  ;;  %v1653_v18 = vld [vmem:[#allocation5 + $0x284] sm:$0xf0]  ;;  %v87_v20 = vld [vmem:[#allocation2 + $0x20] sm:$0xff] }
  0x45   :  { %816 = vmatpush.bf16.msra.mxu2 %v1225_v22  ;;  %v94_v21 = vld [vmem:[#allocation2 + $0x58] sm:$0xff]  ;;  %v1588_v22 = vld [vmem:[#allocation5 + $0x84] sm:$0xf]  ;;  %v1634_v25 = vld [vmem:[#allocation5 + $0x1f4] sm:$0xf]  ;;  %v1433_v32 = vor.u32 %v1650_v14, %v1430_v16  ;;  %v1437_v33 = vor.u32 %v1653_v18, %v1436_v17 }
  0x46   :  { %803 = vmatpush.bf16.msrb.mxu3 %v1153_v28  ;;  %v1182_v24 = vld [vmem:[#allocation5 + $0x88] sm:$0xf0]  ;;  %v1366_v26 = vld [vmem:[#allocation5 + $0x1f8] sm:$0xf0]  ;;  %v1305_v28 = vor.u32 %v1618_v12, %v1302_v13  ;;  %v1666_v29 = vld [vmem:[#allocation5 + $0x2f4] sm:$0xf]  ;;  %v1906_v37 = vpack.c.bf16 %v94_v21, %v87_v20 }
  0x47   :  { %775 = vmatpush.bf16.msrb.mxu1 %v1469_v31  ;;  %v1494_v30 = vld [vmem:[#allocation5 + $0x2f8] sm:$0xf0]  ;;  %v95_v34 = vld [vmem:[#allocation2 + $0x60] sm:$0xff]  ;;  %v1294_v36 = vld [vmem:[#allocation5 + $0x168] sm:$0xf0]  ;;  %v1185_v38 = vor.u32 %v1588_v22, %v1182_v24  ;;  %v1369_v41 = vor.u32 %v1634_v25, %v1366_v26 }
  0x48   :  { %762 = vmatpush.bf16.msrb.mxu0 %v1397_v39  ;;  %1506 = vmatmul.msk.bf16.vlgmr.msrb.gmra.mxu2 %vm698_vm0, %v1902_v48  ;;  %v88_v31 = vld [vmem:[#allocation2 + $0x28] sm:$0xff]  ;;  %v1648_v39 = vld [vmem:[#allocation5 + $0x264] sm:$0xf]  ;;  %v1422_v40 = vld [vmem:[#allocation5 + $0x268] sm:$0xf0] }
  0x49   :  { %817 = vmatpush.bf16.msra.mxu2 %v1217_v35  ;;  %v1616_v35 = vld [vmem:[#allocation5 + $0x164] sm:$0xf]  ;;  %v1908_v44 = vpack.c.bf16 %v95_v34, %v88_v31  ;;  %v1358_v46 = vld [vmem:[#allocation5 + $0x1e8] sm:$0xf0]  ;;  %v1425_v50 = vor.u32 %v1648_v39, %v1422_v40  ;;  %v1614_v51 = vld [vmem:[#allocation5 + $0x154] sm:$0xf] }
  0x4a   :  { %804 = vmatpush.bf16.msrb.mxu3 %v1145_v42  ;;  %v1497_v42 = vor.u32 %v1666_v29, %v1494_v30  ;;  %v1632_v43 = vld [vmem:[#allocation5 + $0x1e4] sm:$0xf]  ;;  %v1646_v53 = vld [vmem:[#allocation5 + $0x254] sm:$0xf]  ;;  %v1414_v55 = vld [vmem:[#allocation5 + $0x258] sm:$0xf0] }
  0x4b   :  { %776 = vmatpush.bf16.msrb.mxu1 %v1461_v45  ;;  %v1297_v45 = vor.u32 %v1616_v35, %v1294_v36  ;;  %v1664_v47 = vld [vmem:[#allocation5 + $0x2e4] sm:$0xf]  ;;  %v1630_v58 = vld [vmem:[#allocation5 + $0x1d4] sm:$0xf]  ;;  %v1478_v0 = vld [vmem:[#allocation5 + $0x2d8] sm:$0xf0]  ;;  %v1417_v1 = vor.u32 %v1646_v53, %v1414_v55 }
  0x4c   :  { %763 = vmatpush.bf16.msrb.mxu0 %v1389_v52  ;;  %v1286_v52 = vld [vmem:[#allocation5 + $0x158] sm:$0xf0]  ;;  %v1662_v62 = vld [vmem:[#allocation5 + $0x2d4] sm:$0xf]  ;;  %v1278_v3 = vld [vmem:[#allocation5 + $0x148] sm:$0xf0] }
  0x4d   :  { %818 = vmatpush.bf16.msra.mxu2 %v1209_v49  ;;  %v1486_v49 = vld [vmem:[#allocation5 + $0x2e8] sm:$0xf0]  ;;  %v1289_v59 = vor.u32 %v1614_v51, %v1286_v52  ;;  %v1644_v5 = vld [vmem:[#allocation5 + $0x244] sm:$0xf]  ;;  %v1481_v8 = vor.u32 %v1662_v62, %v1478_v0  ;;  %v1270_v16 = vld [vmem:[#allocation5 + $0x138] sm:$0xf0] }
  0x4e   :  { %805 = vmatpush.bf16.msrb.mxu3 %v1137_v56  ;;  %v1361_v56 = vor.u32 %v1632_v43, %v1358_v46  ;;  %v1489_v57 = vor.u32 %v1664_v47, %v1486_v49  ;;  %v1406_v6 = vld [vmem:[#allocation5 + $0x248] sm:$0xf0]  ;;  %v1628_v9 = vld [vmem:[#allocation5 + $0x1c4] sm:$0xf]  ;;  %v1642_v17 = vld [vmem:[#allocation5 + $0x234] sm:$0xf] }
  0x4f   :  { %777 = vmatpush.bf16.msrb.mxu1 %v1453_v61  ;;  %v1350_v61 = vld [vmem:[#allocation5 + $0x1d8] sm:$0xf0]  ;;  %v1342_v10 = vld [vmem:[#allocation5 + $0x1c8] sm:$0xf0]  ;;  %v1660_v12 = vld [vmem:[#allocation5 + $0x2c4] sm:$0xf]  ;;  %v1409_v14 = vor.u32 %v1644_v5, %v1406_v6 }
  0x50   :  { %764 = vmatpush.bf16.msrb.mxu0 %v1381_v7  ;;  %v1353_v7 = vor.u32 %v1630_v58, %v1350_v61  ;;  %v1470_v13 = vld [vmem:[#allocation5 + $0x2c8] sm:$0xf0]  ;;  %v1345_v18 = vor.u32 %v1628_v9, %v1342_v10  ;;  %v1334_v21 = vld [vmem:[#allocation5 + $0x1b8] sm:$0xf0]  ;;  %v1658_v22 = vld [vmem:[#allocation5 + $0x2b4] sm:$0xf] }
  0x51   :  { %819 = vmatpush.bf16.msra.mxu2 %v1201_v2  ;;  %v1612_v2 = vld [vmem:[#allocation5 + $0x144] sm:$0xf]  ;;  %v1262_v26 = vld [vmem:[#allocation5 + $0x128] sm:$0xf0]  ;;  %v1254_v39 = vld [vmem:[#allocation5 + $0x118] sm:$0xf0] }
  0x52   :  { %806 = vmatpush.bf16.msrb.mxu3 %v1129_v11  ;;  %v1281_v11 = vor.u32 %v1612_v2, %v1278_v3  ;;  %v1608_v25 = vld [vmem:[#allocation5 + $0x124] sm:$0xf]  ;;  %v1454_v35 = vld [vmem:[#allocation5 + $0x2a8] sm:$0xf0]  ;;  %v1638_v40 = vld [vmem:[#allocation5 + $0x214] sm:$0xf] }
  0x53   :  { %778 = vmatpush.bf16.msrb.mxu1 %v1445_v15  ;;  %v1610_v15 = vld [vmem:[#allocation5 + $0x134] sm:$0xf]  ;;  %v1624_v31 = vld [vmem:[#allocation5 + $0x1a4] sm:$0xf]  ;;  %v1318_v47 = vld [vmem:[#allocation5 + $0x198] sm:$0xf0] }
  0x54   :  { %765 = vmatpush.bf16.msrb.mxu0 %v1373_v23  ;;  %v1273_v20 = vor.u32 %v1610_v15, %v1270_v16  ;;  %v1462_v23 = vld [vmem:[#allocation5 + $0x2b8] sm:$0xf0]  ;;  %v1656_v34 = vld [vmem:[#allocation5 + $0x2a4] sm:$0xf]  ;;  %v1654_v49 = vld [vmem:[#allocation5 + $0x294] sm:$0xf] }
  0x55   :  { %820 = vmatpush.bf16.msra.mxu2 %v1193_v19  ;;  %v1626_v19 = vld [vmem:[#allocation5 + $0x1b4] sm:$0xf]  ;;  %v1465_v30 = vor.u32 %v1658_v22, %v1462_v23  ;;  %v1457_v43 = vor.u32 %v1656_v34, %v1454_v35  ;;  %v1604_v52 = vld [vmem:[#allocation5 + $0x104] sm:$0xf]  ;;  %v1246_v53 = vld [vmem:[#allocation5 + $0x108] sm:$0xf0] }
  0x56   :  { %807 = vmatpush.bf16.msrb.mxu3 %v1121_v27  ;;  %v1640_v27 = vld [vmem:[#allocation5 + $0x224] sm:$0xf]  ;;  %v1337_v29 = vor.u32 %v1626_v19, %v1334_v21  ;;  %v1502_v58 = vld [vmem:[#allocation5 + $0x308] sm:$0xf0]  ;;  %v1249_v62 = vor.u32 %v1604_v52, %v1246_v53  ;;  %v1670_v15 = vld [vmem:[#allocation8] sm:$0xff] }
  0x57   :  { %779 = vmatpush.bf16.msrb.mxu1 %v1437_v33  ;;  %766 = vmatmul.bf16.vlgmr.msrb.gmra.mxu0 %v1906_v37  ;;  %v1326_v33 = vld [vmem:[#allocation5 + $0x1a8] sm:$0xf0]  ;;  %v1636_v55 = vld [vmem:[#allocation5 + $0x204] sm:$0xf]  ;;  %v1679_v53 = vld [vmem:[#allocation8 + $0x48] sm:$0xff] }
  0x58   :  { %828 = vmatpush.bf16.msra.mxu0 %v1305_v28  ;;  %v1390_v28 = vld [vmem:[#allocation5 + $0x228] sm:$0xf0]  ;;  %v1620_v0 = vld [vmem:[#allocation5 + $0x184] sm:$0xf] }
  0x59   :  { %821 = vmatpush.bf16.msra.mxu2 %v1185_v38  ;;  %808 = vmatmul.bf16.vlgmr.msrb.gmra.mxu3 %v1892_v60  ;;  %v1473_v60 = vor.u32 %v1660_v12, %v1470_v13  ;;  %v1393_v36 = vor.u32 %v1640_v27, %v1390_v28  ;;  %v1606_v38 = vld [vmem:[#allocation5 + $0x114] sm:$0xf]  ;;  %v1652_v3 = vld [vmem:[#allocation5 + $0x284] sm:$0xf]  ;;  %v1438_v5 = vld [vmem:[#allocation5 + $0x288] sm:$0xf0] }
  0x5a   :  { %856 = vmatpush.bf16.msra.mxu3 %v1433_v32  ;;  %780 = vmatmul.bf16.vlgmr.msrb.gmra.mxu1 %v1908_v44  ;;  %v1265_v32 = vor.u32 %v1608_v25, %v1262_v26  ;;  %v1257_v46 = vor.u32 %v1606_v38, %v1254_v39  ;;  %v1677_v9 = vld [vmem:[#allocation8 + $0x38] sm:$0xff]  ;;  %v1676_v10 = vld [vmem:[#allocation8 + $0x30] sm:$0xff]  ;;  %v1674_v12 = vld [vmem:[#allocation8 + $0x20] sm:$0xff] }
  0x5b   :  { %842 = vmatpush.bf16.msra.mxu1 %v1369_v41  ;;  %v1382_v41 = vld [vmem:[#allocation5 + $0x218] sm:$0xf0]  ;;  %v1673_v13 = vld [vmem:[#allocation8 + $0x18] sm:$0xff]  ;;  %v1684_v27 = vld [vmem:[#allocation8 + $0x70] sm:$0xff] }
  0x5c   :  { %829 = vmatpush.bf16.msra.mxu0 %v1297_v45  ;;  %822 = vmatmul.bf16.vlgmr.msra.gmra.mxu2 %v1896_v4  ;;  %v1398_v4 = vld [vmem:[#allocation5 + $0x238] sm:$0xf0]  ;;  %v1622_v45 = vld [vmem:[#allocation5 + $0x194] sm:$0xf]  ;;  %v1385_v51 = vor.u32 %v1638_v40, %v1382_v41  ;;  %v1685_v22 = vld [vmem:[#allocation8 + $0x78] sm:$0xff] }
  0x5d   :  { %870 = vmatpush.bf16.msrb.mxu2 %v1497_v42  ;;  %v1401_v24 = vor.u32 %v1642_v17, %v1398_v4  ;;  %v1329_v42 = vor.u32 %v1624_v31, %v1326_v33  ;;  %v1683_v33 = vld [vmem:[#allocation8 + $0x68] sm:$0xff]  ;;  %v1682_v38 = vld [vmem:[#allocation8 + $0x60] sm:$0xff] }
  0x5e   :  { %857 = vmatpush.bf16.msra.mxu3 %v1425_v50  ;;  %v1446_v50 = vld [vmem:[#allocation5 + $0x298] sm:$0xf0] }
  0x5f   :  { %843 = vmatpush.bf16.msra.mxu1 %v1361_v56  ;;  %v1374_v56 = vld [vmem:[#allocation5 + $0x208] sm:$0xf0]  ;;  %v1449_v61 = vor.u32 %v1654_v49, %v1446_v50  ;;  %v1680_v50 = vld [vmem:[#allocation8 + $0x50] sm:$0xff] }
  0x60   :  { %830 = vmatpush.bf16.msra.mxu0 %v1289_v59  ;;  %v1321_v59 = vor.u32 %v1622_v45, %v1318_v47  ;;  %v1377_v2 = vor.u32 %v1636_v55, %v1374_v56  ;;  %v1681_v45 = vld [vmem:[#allocation8 + $0x58] sm:$0xff]  ;;  %v1678_v56 = vld [vmem:[#allocation8 + $0x40] sm:$0xff] }
  0x61   :  { %871 = vmatpush.bf16.msrb.mxu2 %v1489_v57  ;;  %v1668_v57 = vld [vmem:[#allocation5 + $0x304] sm:$0xf] }
  0x62   :  { %858 = vmatpush.bf16.msra.mxu3 %v1417_v1  ;;  %v1310_v1 = vld [vmem:[#allocation5 + $0x188] sm:$0xf0]  ;;  %v1505_v6 = vor.u32 %v1668_v57, %v1502_v58 }
  0x63   :  { %844 = vmatpush.bf16.msra.mxu1 %v1353_v7  ;;  %v1313_v7 = vor.u32 %v1620_v0, %v1310_v1 }
  0x64   :  { %831 = vmatpush.bf16.msra.mxu0 %v1281_v11  ;;  %v1675_v11 = vld [vmem:[#allocation8 + $0x28] sm:$0xff] }
  0x65   :  { %872 = vmatpush.bf16.msrb.mxu2 %v1481_v8  ;;  %v1441_v8 = vor.u32 %v1652_v3, %v1438_v5 }
  0x66   :  { %859 = vmatpush.bf16.msra.mxu3 %v1409_v14 }
  0x67   :  { %845 = vmatpush.bf16.msra.mxu1 %v1345_v18 }
  0x68   :  { %832 = vmatpush.bf16.msra.mxu0 %v1273_v20 }
  0x69   :  { %873 = vmatpush.bf16.msrb.mxu2 %v1473_v60 }
  0x6a   :  { %860 = vmatpush.bf16.msra.mxu3 %v1401_v24 }
  0x6b   :  { %846 = vmatpush.bf16.msra.mxu1 %v1337_v29 }
  0x6c   :  { %833 = vmatpush.bf16.msra.mxu0 %v1265_v32 }
  0x6d   :  { %874 = vmatpush.bf16.msrb.mxu2 %v1465_v30 }
  0x6e   :  { %861 = vmatpush.bf16.msra.mxu3 %v1393_v36 }
  0x6f   :  { %847 = vmatpush.bf16.msra.mxu1 %v1329_v42 }
  0x70   :  { %834 = vmatpush.bf16.msra.mxu0 %v1257_v46 }
  0x71   :  { %875 = vmatpush.bf16.msrb.mxu2 %v1457_v43 }
  0x72   :  { %862 = vmatpush.bf16.msra.mxu3 %v1385_v51 }
  0x73   :  { %848 = vmatpush.bf16.msra.mxu1 %v1321_v59 }
  0x74   :  { %835 = vmatpush.bf16.msra.mxu0 %v1249_v62 }
  0x75   :  { %876 = vmatpush.bf16.msrb.mxu2 %v1449_v61 }
  0x76   :  { %863 = vmatpush.bf16.msra.mxu3 %v1377_v2 }
  0x77   :  { %849 = vmatpush.bf16.msra.mxu1 %v1313_v7  ;;  %836 = vmatmul.bf16.vlgmr.msra.gmra.mxu0 %v1890_v54  ;;  %v1672_v54 = vld [vmem:[#allocation8 + $0x10] sm:$0xff] }
  0x78   :  { %891 = vmatpush.bf16.msrb.mxu0 %v1505_v6 }
  0x79   :  { %864 = vmatmul.bf16.vlgmr.msra.gmra.mxu3 %v1906_v37  ;;  %877 = vmatpush.bf16.msrb.mxu2 %v1441_v8  ;;  %v1671_v37 = vld [vmem:[#allocation8 + $0x8] sm:$0xff] }
  0x7a   :  { %850 = vmatmul.bf16.vlgmr.msra.gmra.mxu1 %v1894_v63  ;;  %v202_v63 = vld [vmem:[#allocation7] sm:$0x3]  ;;  %1050 = vmatpush.bf16.msrb.mxu3 %v1685_v22 }
  0x7b   :  { %1036 = vmatpush.bf16.msrb.mxu1 %v1677_v9  ;;  %v205_v57 = vperm.slane %v202_v63, 1 }
  0x7c   :  { %878 = vmatmul.bf16.vlgmr.msrb.gmra.mxu2 %v1908_v44 }
  0x7e   :  { %1051 = vmatpush.bf16.msrb.mxu3 %v1684_v27 }
  0x7f   :  { %1037 = vmatpush.bf16.msrb.mxu1 %v1676_v10 }
  0x82   :  { %1052 = vmatpush.bf16.msrb.mxu3 %v1683_v33 }
  0x83   :  { %1038 = vmatpush.bf16.msrb.mxu1 %v1675_v11 }
  0x86   :  { %1053 = vmatpush.bf16.msrb.mxu3 %v1682_v38 }
  0x87   :  { %1507 = vmatmul.msk.bf16.vlgmr.msrb.gmra.mxu0 %vm698_vm0, %v1902_v48  ;;  %1039 = vmatpush.bf16.msrb.mxu1 %v1674_v12  ;;  %v204_v48 = vperm.slane %v202_v63, 0 }
  0x8a   :  { %1054 = vmatpush.bf16.msrb.mxu3 %v1681_v45 }
  0x8b   :  { %1040 = vmatpush.bf16.msrb.mxu1 %v1673_v13 }
  0x8e   :  { %1055 = vmatpush.bf16.msrb.mxu3 %v1680_v50 }
  0x8f   :  { %1041 = vmatpush.bf16.msrb.mxu1 %v1672_v54 }
  0x92   :  { %1056 = vmatpush.bf16.msrb.mxu3 %v1679_v53 }
  0x93   :  { %1042 = vmatpush.bf16.msrb.mxu1 %v1671_v37 }
  0x96   :  { %1057 = vmatpush.bf16.msrb.mxu3 %v1678_v56 }
  0x97   :  { %1043 = vmatpush.bf16.msrb.mxu1 %v1670_v15 }
  0xb4   :  { %v711_v14 = vpop.f32.mrf.mxu0 }
  0xb5   :  { %v712_v17 = vadd.f32 %v711_v14, %v204_v48 }
  0xb7   :  { %v725_v16 = vpop.f32.mrf.mxu1 }
  0xb8   :  { %v726_v60 = vadd.f32 %v725_v16, %v712_v17 }
  0xbb   :  { %v739_v44 = vpop.f32.mrf.mxu2 }
  0xbc   :  { %v713_v4 = vpop.f32.mrf.mxu0  ;;  %v753_v19 = vpop.f32.mrf.mxu3  ;;  %v740_v23 = vadd.f32 %v739_v44, %v726_v60 }
  0xbd   :  { %v714_v21 = vadd.f32 %v713_v4, %v204_v48 }
  0xbe   :  { %v754_v28 = vadd.f32 %v753_v19, %v740_v23  ;;  %v1064_v19 = vlaneseq }
  0xbf   :  { %v727_v20 = vpop.f32.mrf.mxu1 }
  0xc0   :  { %v728_v24 = vadd.f32 %v727_v20, %v714_v21  ;;  %v1697_v21 = vld [vmem:[%s1933_s4] ss:$0 sm:$0xff]  ;;  %v1065_v22 = vand.u32 127, %v1064_v19  ;;  %s1844_s4 = smov [#allocation10]  }
  0xc1   :  { %s1097_s17 = sshll.u32 %s1844_s4, 4  ;;  %s1098_s17 = int_to_ptr.vmem [resolvable:$true] %s1097_s17 }
  0xc2   :  { %vm1066_vm1 = vcmp.lt.s32.totalorder %v1065_v22, 10 }
  0xc3   :  { %v741_v18 = vpop.f32.mrf.mxu2 }
  0xc4   :  { %v742_v30 = vadd.f32 %v741_v18, %v728_v24  ;;  %v755_v32 = vpop.f32.mrf.mxu3 }
  0xc6   :  { %v756_v34 = vadd.f32 %v755_v32, %v742_v30 }
  0xcb   :  { %v795_v26 = vpop.f32.mrf.mxu2 }
  0xd3   :  { %v797_v41 = vpop.f32.mrf.mxu2 }
  0xd4   :  { %v767_v25 = vpop.f32.mrf.mxu0 }
  0xd5   :  { %v768_v31 = vadd.f32 %v767_v25, %v754_v28 }
  0xd7   :  { %v781_v29 = vpop.f32.mrf.mxu1 }
  0xd8   :  { %v782_v35 = vadd.f32 %v781_v29, %v768_v31 }
  0xda   :  { %v796_v42 = vadd.f32 %v795_v26, %v782_v35 }
  0xdc   :  { %v769_v36 = vpop.f32.mrf.mxu0  ;;  %v898_v47 = vmax.f32 %v796_v42, 0.0  ;;  %v809_v52 = vpop.f32.mrf.mxu3 }
  0xdd   :  { %v770_v39 = vadd.f32 %v769_v36, %v756_v34  ;;  %v810_v62 = vadd.f32 %v809_v52, %v205_v57 }
  0xdf   :  { %v783_v40 = vpop.f32.mrf.mxu1  ;;  %v823_v55 = vpop.f32.mrf.mxu2 }
  0xe0   :  { %v784_v43 = vadd.f32 %v783_v40, %v770_v39  ;;  %v824_v1 = vadd.f32 %v823_v55, %v810_v62 }
  0xe2   :  { %v798_v46 = vadd.f32 %v797_v41, %v784_v43 }
  0xe4   :  { %v900_v49 = vmax.f32 %v798_v46, 0.0  ;;  %v811_v58 = vpop.f32.mrf.mxu3 }
  0xe5   :  { %v812_v2 = vadd.f32 %v811_v58, %v205_v57 }
  0xe6   :  { %v902_v51 = vpack.c.bf16 %v900_v49, %v898_v47 }
  0xe7   :  { %v825_v61 = vpop.f32.mrf.mxu2 }
  0xe8   :  { %1044 = vmatmul.bf16.vlgmr.msrb.gmra.mxu1 %v902_v51  ;;  %v826_v7 = vadd.f32 %v825_v61, %v812_v2 }
  0xf4   :  { %v837_v59 = vpop.f32.mrf.mxu0 }
  0xf5   :  { %v838_v8 = vadd.f32 %v837_v59, %v824_v1 }
  0xf7   :  { %v851_v0 = vpop.f32.mrf.mxu1 }
  0xf8   :  { %v852_v11 = vadd.f32 %v851_v0, %v838_v8 }
  0xfc   :  { %v865_v3 = vpop.f32.mrf.mxu3  ;;  %v839_v5 = vpop.f32.mrf.mxu0 }
  0xfd   :  { %v840_v9 = vadd.f32 %v839_v5, %v826_v7  ;;  %v866_v54 = vadd.f32 %v865_v3, %v852_v11 }
  0xff   :  { %v879_v6 = vpop.f32.mrf.mxu2  ;;  %v853_v10 = vpop.f32.mrf.mxu1 }
 0x100   :  { %v854_v37 = vadd.f32 %v853_v10, %v840_v9  ;;  %v880_v44 = vadd.f32 %v879_v6, %v866_v54 }
 0x104   :  { %v867_v12 = vpop.f32.mrf.mxu3  ;;  %v893_v13 = vpop.f32.mrf.mxu0 }
 0x105   :  { %v868_v63 = vadd.f32 %v867_v12, %v854_v37  ;;  %v894_v15 = vadd.f32 %v893_v13, %v880_v44 }
 0x107   :  { %v881_v14 = vpop.f32.mrf.mxu2  ;;  %v899_v4 = vmax.f32 %v894_v15, 0.0 }
 0x108   :  { %v882_v16 = vadd.f32 %v881_v14, %v868_v63 }
 0x10c   :  { %v895_v48 = vpop.f32.mrf.mxu0 }
 0x10d   :  { %v896_v17 = vadd.f32 %v895_v48, %v882_v16 }
 0x10f   :  { %v901_v18 = vmax.f32 %v896_v17, 0.0 }
 0x111   :  { %v903_v60 = vpack.c.bf16 %v901_v18, %v899_v4 }
 0x113   :  { %1058 = vmatmul.bf16.vlgmr.msrb.gmra.mxu3 %v903_v60 }
 0x165   :  { %v1045_v20 = vpop.f32.mrf.mxu1 }
 0x166   :  { %v1046_v23 = vadd.f32 %v1697_v21, %v1045_v20 }
 0x16d   :  { %v1047_v27 = vpop.f32.mrf.mxu1 }
 0x16e   :  { %v1048_v28 = vadd.f32 %v1697_v21, %v1047_v27 }
 0x196   :  { %v1059_v24 = vpop.f32.mrf.mxu3 }
 0x197   :  { %v1060_v25 = vadd.f32 %v1059_v24, %v1046_v23 }
 0x199   :  { %v1067_v26 = vsel %vm1066_vm1, %v1060_v25, -1e+30 }
 0x19a   :  { %1069 = vmax.xlane.f32.xlu0 %v1067_v26 }
 0x19e   :  { %v1061_v29 = vpop.f32.mrf.mxu3 }
 0x19f   :  { %v1062_v30 = vadd.f32 %v1061_v29, %v1048_v28 }
 0x1a1   :  { %v1068_v31 = vsel %vm1066_vm1, %v1062_v30, -1e+30 }
 0x1a2   :  { %1071 = vmax.xlane.f32.xlu0 %v1068_v31 }
 0x20d   :  { %v1070_v32 = vpop.xlane.xlu0 %1069 }
 0x20e   :  { %v1073_v33 = vsub.f32 %v1067_v26, %v1070_v32 }
 0x210   :  { %v1075_v34 = vmul.f32 1.442695, %v1073_v33 }
 0x212   :  { %1698 = vpow2.f32 %v1075_v34 }
 0x215   :  { %v1072_v35 = vpop.xlane.xlu0 %1071 }
 0x216   :  { %v1074_v36 = vsub.f32 %v1068_v31, %v1072_v35 }
 0x218   :  { %v1699_v38 = vpop.eup %1698  ;;  %v1077_v39 = vmul.f32 1.442695, %v1074_v36 }
 0x219   :  { %1079 = vadd.xlane.f32.xlu1 %v1699_v38 }
 0x21a   :  { %1700 = vpow2.f32 %v1077_v39 }
 0x220   :  { %v1701_v40 = vpop.eup %1700 }
 0x221   :  { %1081 = vadd.xlane.f32.xlu1 %v1701_v40 }
 0x28c   :  { %v1080_v41 = vpop.xlane.xlu1 %1079 }
 0x28d   :  { %1702 = vlog2.f32 %v1080_v41 }
 0x293   :  { %v1703_v42 = vpop.eup %1702 }
 0x294   :  { %v1084_v43 = vmul.f32 0.6931472, %v1703_v42  ;;  %v1082_v45 = vpop.xlane.xlu1 %1081 }
 0x295   :  { %1704 = vlog2.f32 %v1082_v45 }
 0x296   :  { %v1087_v46 = vadd.f32 %v1084_v43, %v1070_v32 }
 0x298   :  { %v1089_v47 = vsub.f32 %v1067_v26, %v1087_v46 }
 0x29a   :  { %1091 = vst [vmem:[#allocation10] sm:$0xff] %v1089_v47 }
 0x29b   :  { %v1705_v49 = vpop.eup %1704 }
 0x29c   :  { %v1086_v50 = vmul.f32 0.6931472, %v1705_v49 }
 0x29e   :  { %v1088_v51 = vadd.f32 %v1086_v50, %v1072_v35 }
 0x2a0   :  { %v1090_v52 = vsub.f32 %v1068_v31, %v1088_v51 }
 0x2a2   :  { %1092 = vst [vmem:[#allocation10 + $0x8] sm:$0xff] %v1090_v52 }
 0x2a3   :  { %1105 = dma.vmem_to_hbm [thread:$0]  %s1098_s17, 256, %s1100_s20, [#allocation4], %s1835_s26, %s1835_s26, %s1836_s27  }
 0x2a4   :  { %1832 = dma.done.wait [#allocation4], 256  }
 0x2a5   :  { %1833 = vsyncadd [#allocation4], 4294967040 }
 0x2a6   :  { %1110 = vsyncpa [#allocation3], 1 }
 0x2a7   :  { %1111 = vsyncpa [#allocation6], 1 }
 0x2a8   :  { %1112 = vsyncpa [#allocation9], 1 }
 0x2a9   :  { %1113 = vsyncpa [#allocation4], 1 }

</bundles_post_ra>
